<compile_context>
chip_gen: v7x
topology: tpu7x:2x2x1
jax: 0.10.0
libtpu: 0.0.40
codegen_flags: <defaults>
</compile_context>

<pallas_src>
import jax
import jax.numpy as jnp
from jax.experimental import pallas as pl
from jax.experimental.pallas import tpu as pltpu


# ----------------------------------------------------------------------------
# Packed-parameter layout (all sections 8-row / sublane aligned, 128 lanes).
# ----------------------------------------------------------------------------
_IN = 3          # module in_dim
_HP = 128        # padded hidden dim  (real hidden = 32)
_LANES = 128     # lane width of the packed parameter buffer

_ROW_W1 = 0                 # rows [0, 3)    : w1  (in_dim, hidden) padded
_ROW_B1 = 8                 # row  8         : b1
_ROW_W2 = 16                # rows [16, 144) : w2  (hidden, out) padded
_ROW_B2 = _ROW_W2 + _HP     # row  144       : b2
_PROWS = _ROW_B2 + 8        # 152 rows total


def pack_params(w1, b1, w2, b2):
    """Pack (w1, b1, w2, b2) into a single zero-padded (152, 128) f32 buffer.

    Call this ONCE per weight update (optimizer step) and reuse the result for
    every forward call; do not rebuild it per step.
    """
    in_dim, hidden = w1.shape
    out_dim = w2.shape[1]
    p = jnp.zeros((_PROWS, _LANES), jnp.float32)
    p = p.at[_ROW_W1:_ROW_W1 + in_dim, :hidden].set(w1.astype(jnp.float32))
    p = p.at[_ROW_B1, :hidden].set(b1.reshape(-1).astype(jnp.float32))
    p = p.at[_ROW_W2:_ROW_W2 + hidden, :out_dim].set(w2.astype(jnp.float32))
    p = p.at[_ROW_B2, :out_dim].set(b2.reshape(-1).astype(jnp.float32))
    return p


# ----------------------------------------------------------------------------
# Kernel: identical body for the grid-less and batch-tiled paths.
# ----------------------------------------------------------------------------
def scalar_encoder_kernel(x_ref, p_ref, o_ref):
    out_dim = o_ref.shape[-1]
    # x tile: (tb, 3). Compute in f32 (keeps the VPU path clean on v5e too).
    x = x_ref[...].astype(jnp.float32)

    # fc1 (K=3) on the VPU: three broadcast fmuls + bias; no MXU round trip.
    h = x[:, 0:1] * p_ref[_ROW_W1 + 0:_ROW_W1 + 1, :]
    h = h + x[:, 1:2] * p_ref[_ROW_W1 + 1:_ROW_W1 + 2, :]
    h = h + x[:, 2:3] * p_ref[_ROW_W1 + 2:_ROW_W1 + 3, :]
    h = jnp.maximum(h + p_ref[_ROW_B1:_ROW_B1 + 1, :], 0.0)   # (tb, 128)

    # fc2 on the MXU: (tb, 128) @ (128, 128), full K depth thanks to padding.
    y = jnp.dot(h, p_ref[_ROW_W2:_ROW_W2 + _HP, :],
                preferred_element_type=jnp.float32)
    y = jnp.maximum(y + p_ref[_ROW_B2:_ROW_B2 + 1, :], 0.0)   # (tb, 128)

    # Store only the real out_dim lanes -> lane traffic to HBM is (tb, 64).
    o_ref[...] = y[:, :out_dim].astype(o_ref.dtype)


# ----------------------------------------------------------------------------
# Wrappers.
# ----------------------------------------------------------------------------
def scalar_encoder_packed(x, params, *, out_dim=64, block_b=512):
    """x: (B, 3); params: packed (152, 128) f32 buffer -> (B, out_dim)."""
    B, in_dim = x.shape
    assert in_dim == _IN, f"expected in_dim={_IN}, got {in_dim}"
    assert params.shape == (_PROWS, _LANES)

    if B <= block_b:
        # Small batch: single invocation, no grid / pipeline machinery,
        # everything resident in VMEM (two input DMAs total).
        return pl.pallas_call(
            scalar_encoder_kernel,
            out_shape=jax.ShapeDtypeStruct((B, out_dim), x.dtype),
            in_specs=[
                pl.BlockSpec(memory_space=pltpu.MemorySpace.VMEM),
                pl.BlockSpec(memory_space=pltpu.MemorySpace.VMEM),
            ],
            out_specs=pl.BlockSpec(memory_space=pltpu.MemorySpace.VMEM),
        )(x, params)

    # Large batch: tile B (block_b rows/step, multiple of 8), weights resident
    # across the grid, ragged last block handled by Pallas (masked), B axis
    # "parallel" so the v7x megacore can shard it.
    nb = pl.cdiv(B, block_b)
    return pl.pallas_call(
        scalar_encoder_kernel,
        out_shape=jax.ShapeDtypeStruct((B, out_dim), x.dtype),
        grid_spec=pltpu.PrefetchScalarGridSpec(
            num_scalar_prefetch=0,
            grid=(nb,),
            in_specs=[
                pl.BlockSpec((block_b, _IN), lambda i: (i, 0)),
                pl.BlockSpec((_PROWS, _LANES), lambda i: (0, 0)),   # resident
            ],
            out_specs=pl.BlockSpec((block_b, out_dim), lambda i: (i, 0)),
        ),
        compiler_params=pltpu.CompilerParams(
            dimension_semantics=("parallel",),
        ),
    )(x, params)


def scalar_encoder(x, w1, b1, w2, b2, *, block_b=512):
    """Convenience wrapper (packs params per call — prefer scalar_encoder_packed)."""
    return scalar_encoder_packed(x, pack_params(w1, b1, w2, b2),
                                 out_dim=w2.shape[1], block_b=block_b)


def reference(x, w1, b1, w2, b2):
    h = jnp.maximum(x @ w1 + b1, 0.0)
    return jnp.maximum(h @ w2 + b2, 0.0)


if __name__ == "__main__":
    in_dim, hidden_dim, out_dim = 3, 32, 64

    key = jax.random.PRNGKey(0)
    kx, k1, kb1, k2, kb2 = jax.random.split(key, 5)

    # Deterministic synthetic parameters (nn.Linear shapes, stored transposed:
    # (in_features, out_features), so the math is plain x @ W + b).
    w1 = jax.random.normal(k1, (in_dim, hidden_dim), dtype=jnp.float32) * 0.1
    b1 = jax.random.normal(kb1, (1, hidden_dim), dtype=jnp.float32) * 0.1
    w2 = jax.random.normal(k2, (hidden_dim, out_dim), dtype=jnp.float32) * 0.1
    b2 = jax.random.normal(kb2, (1, out_dim), dtype=jnp.float32) * 0.1

    # Pack ONCE (hoisted out of the forward path, as in real usage).
    params = pack_params(w1, b1, w2, b2)

    # Small-batch path (the module's actual use case: B=2).
    B = 2
    x = jax.random.normal(kx, (B, in_dim), dtype=jnp.float32)
    out = jax.block_until_ready(scalar_encoder_packed(x, params))
    ref = reference(x, w1, b1, w2, b2)
    assert out.shape == (B, out_dim)
    assert jnp.allclose(out, ref, atol=1e-5, rtol=1e-5)

    # Batch-tiled path (ragged B to exercise grid + masked last block +
    # resident weights).
    B_big = 2051
    x_big = jax.random.normal(kx, (B_big, in_dim), dtype=jnp.float32)
    out_big = jax.block_until_ready(
        scalar_encoder_packed(x_big, params, block_b=512))
    ref_big = reference(x_big, w1, b1, w2, b2)
    assert out_big.shape == (B_big, out_dim)
    assert jnp.allclose(out_big, ref_big, atol=1e-4, rtol=1e-4)

    print("KERNEL_OK")
</pallas_src>

<mosaic_0001>
module attributes {stable_mosaic.version = 11 : i64} {
  func.func @scalar_encoder_kernel(%arg0: memref<2x3xf32, #tpu.memory_space<vmem>>, %arg1: memref<152x128xf32, #tpu.memory_space<vmem>>, %arg2: memref<2x64xf32, #tpu.memory_space<vmem>>) attributes {dimension_semantics = [], scalar_prefetch = 0 : i64, scratch_operands = 0 : i64, tpu.core_type = #tpu.core_type<tc>} {
    %c0 = arith.constant 0 : index
    %c0_0 = arith.constant 0 : index
    %0 = vector.load %arg0[%c0, %c0_0] : memref<2x3xf32, #tpu.memory_space<vmem>>, vector<2x3xf32>
    %1 = vector.extract_strided_slice %0 {offsets = [0, 0], sizes = [2, 1], strides = [1, 1]} : vector<2x3xf32> to vector<2x1xf32>
    %c0_1 = arith.constant 0 : index
    %c0_2 = arith.constant 0 : index
    %2 = vector.load %arg1[%c0_1, %c0_2] : memref<152x128xf32, #tpu.memory_space<vmem>>, vector<1x128xf32>
    %3 = vector.broadcast %1 : vector<2x1xf32> to vector<2x128xf32>
    %4 = vector.broadcast %2 : vector<1x128xf32> to vector<2x128xf32>
    %5 = arith.mulf %3, %4 : vector<2x128xf32>
    %6 = vector.extract_strided_slice %0 {offsets = [0, 1], sizes = [2, 1], strides = [1, 1]} : vector<2x3xf32> to vector<2x1xf32>
    %c1 = arith.constant 1 : index
    %c0_3 = arith.constant 0 : index
    %7 = vector.load %arg1[%c1, %c0_3] : memref<152x128xf32, #tpu.memory_space<vmem>>, vector<1x128xf32>
    %8 = vector.broadcast %6 : vector<2x1xf32> to vector<2x128xf32>
    %9 = vector.broadcast %7 : vector<1x128xf32> to vector<2x128xf32>
    %10 = arith.mulf %8, %9 : vector<2x128xf32>
    %11 = arith.addf %5, %10 : vector<2x128xf32>
    %12 = vector.extract_strided_slice %0 {offsets = [0, 2], sizes = [2, 1], strides = [1, 1]} : vector<2x3xf32> to vector<2x1xf32>
    %c2 = arith.constant 2 : index
    %c0_4 = arith.constant 0 : index
    %13 = vector.load %arg1[%c2, %c0_4] : memref<152x128xf32, #tpu.memory_space<vmem>>, vector<1x128xf32>
    %14 = vector.broadcast %12 : vector<2x1xf32> to vector<2x128xf32>
    %15 = vector.broadcast %13 : vector<1x128xf32> to vector<2x128xf32>
    %16 = arith.mulf %14, %15 : vector<2x128xf32>
    %17 = arith.addf %11, %16 : vector<2x128xf32>
    %c8 = arith.constant 8 : index
    %c0_5 = arith.constant 0 : index
    %18 = vector.load %arg1[%c8, %c0_5] : memref<152x128xf32, #tpu.memory_space<vmem>>, vector<1x128xf32>
    %19 = vector.broadcast %18 : vector<1x128xf32> to vector<2x128xf32>
    %20 = arith.addf %17, %19 : vector<2x128xf32>
    %cst = arith.constant 0.000000e+00 : f32
    %21 = vector.broadcast %cst : f32 to vector<2x128xf32>
    %22 = arith.maximumf %20, %21 : vector<2x128xf32>
    %c16 = arith.constant 16 : index
    %c0_6 = arith.constant 0 : index
    %23 = vector.load %arg1[%c16, %c0_6] : memref<152x128xf32, #tpu.memory_space<vmem>>, vector<128x128xf32>
    %cst_7 = arith.constant dense<0.000000e+00> : vector<2x128xf32>
    %24 = tpu.matmul %22, %23, %cst_7 {dimension_numbers = #tpu.dot_dimension_numbers<[1], [0], [0], [1], [0, 0, 1, 1], [], []>} : vector<2x128xf32>, vector<128x128xf32>, vector<2x128xf32> -> vector<2x128xf32>
    %c144 = arith.constant 144 : index
    %c0_8 = arith.constant 0 : index
    %25 = vector.load %arg1[%c144, %c0_8] : memref<152x128xf32, #tpu.memory_space<vmem>>, vector<1x128xf32>
    %26 = vector.broadcast %25 : vector<1x128xf32> to vector<2x128xf32>
    %27 = arith.addf %24, %26 : vector<2x128xf32>
    %cst_9 = arith.constant 0.000000e+00 : f32
    %28 = vector.broadcast %cst_9 : f32 to vector<2x128xf32>
    %29 = arith.maximumf %27, %28 : vector<2x128xf32>
    %30 = vector.extract_strided_slice %29 {offsets = [0, 0], sizes = [2, 64], strides = [1, 1]} : vector<2x128xf32> to vector<2x64xf32>
    %c0_10 = arith.constant 0 : index
    %c0_11 = arith.constant 0 : index
    %31 = vector.load %arg2[%c0_10, %c0_11] : memref<2x64xf32, #tpu.memory_space<vmem>>, vector<2x64xf32>
    tpu.vector_store %arg2[%c0_10, %c0_11], %30 {strides = array<i32>} : memref<2x64xf32, #tpu.memory_space<vmem>>, vector<2x64xf32>,
    return
  }
}

</mosaic_0001>

<bundles_post_ra>
// kernel: tpu_custom_call.1
= control target key start
LH: loop header
LB: loop body
LE: loop exit
PB: predicated region body
PF: predicated region fallthrough
CT: control target
= control target key end

     0   :  { %7 = vsyncpa [#allocation3], 0  ;;  %s426_s0 = inlined_call_operand.hbm [shape: f32[2,3], index: 0, kind: input, shape index: {}]   ;;  %s427_s1 = inlined_call_operand.hbm [shape: f32[152,128], index: 1, kind: input, shape index: {}]   ;;  %s428_s2 = inlined_call_operand.hbm [shape: f32[2,64], index: 2, kind: output, shape index: {}]  }
   0x1   :  { %8 = vsyncpa [#allocation6], 0 }
   0x2   :  { %9 = vsyncpa [#allocation4], 0  ;;  %s357_s9 = smov [#allocation2]   ;;  %s358_s11 = smov [#allocation5]  }
   0x3   :  { %s16_s10 = sshll.u32 %s357_s9, 4  ;;  %s25_s12 = sshll.u32 %s358_s11, 4  ;;  %s17_s10 = int_to_ptr.vmem [resolvable:$true] %s16_s10  ;;  %s383_s12 = int_to_ptr.vmem [resolvable:$true] %s25_s12 }
   0x4   :  { %s285_s15 = scalar_lea.hbm %s426_s0, 32 }
   0x5   :  { %p286_p0 = scmp.ne.s32.totalorder %s426_s0, %s285_s15  ;;  %p289_p1 = scmp.lt.u32.totalorder %s285_s15, %s426_s0 }
   0x7   :  { %p291_p2 = pnand %p289_p1, %p286_p0 }
   0x9   :  { %294 = shalt.err (!%p291_p2)
}
   0xa   :  { %s295_s20 = scalar_lea.vmem %s17_s10, 32  ;;  %p300_p4 = scmp.lt.s32.totalorder %s17_s10, %s17_s10 }
   0xb   :  { %p296_p3 = scmp.ne.s32.totalorder %s17_s10, %s295_s20  ;;  %p301_p5 = scmp.lt.s32.totalorder %s295_s20, %s295_s20 }
   0xd   :  { %p302_p6 = por %p301_p5, %p300_p4 }
   0xf   :  { %p303_p7 = pnand %p302_p6, %p296_p3 }
  0x11   :  { %306 = shalt.err (!%p303_p7)
}
  0x12   :  { %19 = dma.hbm_to_vmem [thread:$0]  %s426_s0, 32, %s17_s10, [#allocation3]  }
  0x13   :  { %s307_s25 = scalar_lea.hbm %s427_s1, 2432 }
  0x14   :  { %p308_p8 = scmp.ne.s32.totalorder %s427_s1, %s307_s25  ;;  %p311_p9 = scmp.lt.u32.totalorder %s307_s25, %s427_s1 }
  0x16   :  { %p313_p10 = pnand %p311_p9, %p308_p8 }
  0x18   :  { %316 = shalt.err (!%p313_p10)
}
  0x19   :  { %s317_s30 = scalar_lea.vmem %s383_s12, 2432  ;;  %p322_p12 = scmp.lt.s32.totalorder %s383_s12, %s383_s12 }
  0x1a   :  { %p318_p11 = scmp.ne.s32.totalorder %s383_s12, %s317_s30  ;;  %p323_p13 = scmp.lt.s32.totalorder %s317_s30, %s317_s30 }
  0x1c   :  { %p324_p0 = por %p323_p13, %p322_p12 }
  0x1e   :  { %p325_p1 = pnand %p324_p0, %p318_p11 }
  0x20   :  { %328 = shalt.err (!%p325_p1)
}
  0x21   :  { %s359_s0 = smov 128   ;;  %s360_s3 = smov 8  }
  0x22   :  { %31 = dma.hbm_to_vmem [thread:$0]  %s427_s1, 2432, %s383_s12, [#allocation6], %s359_s0, %s359_s0, %s360_s3  }
  0x23   :  { %351 = dma.done.wait [#allocation3], 32  }
  0x24   :  { %352 = vsyncadd [#allocation3], 4294967264 }
  0x25   :  { %353 = dma.done.wait [#allocation6], 2432  }
  0x26   :  { %354 = vsyncadd [#allocation6], 4294964864  ;;  %v361_v0 = vmov 0   ;;  %v362_v1 = vmov 2   ;;  %v363_v2 = vmov 0.0|0.0   ;;  %v79_v4 = vld [vmem:[#allocation5 + $0x10] sm:$0xff] }
  0x27   :  { %281 = vset.pattern.permute.xlu0 %v361_v0  ;;  %283 = vset.pattern.permute.xlu1 %v362_v1  ;;  %v38_v3 = vld [vmem:[#allocation2] sm:$0x3]  ;;  %v81_v7 = vld [vmem:[#allocation5 + $0x20] sm:$0xff]  ;;  %v82_v8 = vld [vmem:[#allocation5 + $0x28] sm:$0xff]  ;;  %v364_v12 = vmov 1   ;;  %vm365_vm0 = vmmov 0  }
  0x28   :  { %246 = vmatprep.subr.bf16.mxu0 %v363_v2  ;;  %v80_v5 = vld [vmem:[#allocation5 + $0x18] sm:$0xff]  ;;  %42 = vperm.xlu0 %281, %v38_v3   ;;  %v250_v9 = vpack.c.bf16 %v82_v8, %v81_v7  ;;  %v83_v10 = vld [vmem:[#allocation5 + $0x30] sm:$0xff]  ;;  %v85_v14 = vld [vmem:[#allocation5 + $0x40] sm:$0xff]  ;;  %v366_v17 = vmov 0.0   ;;  %s367_s1 = smov [#allocation7]   ;;  %vm171_vm1 = vcmask 517120  }
  0x29   :  { %63 = vperm.xlu1 %283, %v38_v3   ;;  %v247_v6 = vpack.c.bf16 %v80_v5, %v79_v4  ;;  %v84_v11 = vld [vmem:[#allocation5 + $0x38] sm:$0xff]  ;;  %v86_v15 = vld [vmem:[#allocation5 + $0x48] sm:$0xff]  ;;  %243 = vmatprep.mubr.msk.f32.mxu0 %vm365_vm0, %v366_v17  ;;  %v87_v18 = vld [vmem:[#allocation5 + $0x50] sm:$0xff]  ;;  %s179_s6 = sshll.u32 %s367_s1, 4  ;;  %s180_s6 = int_to_ptr.vmem [resolvable:$true] %s179_s6 }
  0x2a   :  { %v253_v13 = vpack.c.bf16 %v84_v11, %v83_v10  ;;  %v256_v16 = vpack.c.bf16 %v86_v15, %v85_v14  ;;  %v88_v19 = vld [vmem:[#allocation5 + $0x58] sm:$0xff]  ;;  %v89_v21 = vld [vmem:[#allocation5 + $0x60] sm:$0xff]  ;;  %v90_v22 = vld [vmem:[#allocation5 + $0x68] sm:$0xff]  ;;  %s329_s7 = scalar_lea.vmem %s180_s6, 32  ;;  %p334_p3 = scmp.lt.s32.totalorder %s180_s6, %s180_s6 }
  0x2b   :  { %248 = vmatpush3.bf16.msra.mxu0 %v247_v6  ;;  %v259_v20 = vpack.c.bf16 %v88_v19, %v87_v18  ;;  %v262_v23 = vpack.c.bf16 %v90_v22, %v89_v21  ;;  %v91_v24 = vld [vmem:[#allocation5 + $0x70] sm:$0xff]  ;;  %v92_v25 = vld [vmem:[#allocation5 + $0x78] sm:$0xff]  ;;  %v93_v27 = vld [vmem:[#allocation5 + $0x80] sm:$0xff]  ;;  %p330_p2 = scmp.ne.s32.totalorder %s180_s6, %s329_s7  ;;  %p335_p4 = scmp.lt.s32.totalorder %s329_s7, %s329_s7 }
  0x2c   :  { %249 = vmatprep.subr.bf16.mxu0 %v363_v2  ;;  %282 = vset.pattern.permute.xlu0 %v364_v12  ;;  %v265_v26 = vpack.c.bf16 %v92_v25, %v91_v24  ;;  %v94_v28 = vld [vmem:[#allocation5 + $0x88] sm:$0xff]  ;;  %v189_v31 = vld [vmem:[#allocation5] ss:$0 sm:$0xff]  ;;  %v190_v32 = vld [vmem:[#allocation5 + $0x1] ss:$0 sm:$0xff] }
  0x2d   :  { %52 = vperm.xlu0 %282, %v38_v3   ;;  %v268_v29 = vpack.c.bf16 %v94_v28, %v93_v27  ;;  %v191_v33 = vld [vmem:[#allocation5 + $0x2] ss:$0 sm:$0xff]  ;;  %v192_v40 = vld [vmem:[#allocation5 + $0x8] ss:$0 sm:$0xff]  ;;  %v193_v44 = vld [vmem:[#allocation5 + $0x90] ss:$0 sm:$0xff]  ;;  %p336_p5 = por %p335_p4, %p334_p3 }
  0x2f   :  { %251 = vmatpush3.bf16.msra.mxu0 %v250_v9  ;;  %p337_p6 = pnand %p336_p5, %p330_p2 }
  0x30   :  { %252 = vmatprep.subr.bf16.mxu0 %v363_v2 }
  0x31   :  { %284 = vset.pattern.permute.xlu0 %v362_v1 }
  0x33   :  { %254 = vmatpush3.bf16.msra.mxu0 %v253_v13 }
  0x34   :  { %255 = vmatprep.subr.bf16.mxu0 %v363_v2 }
  0x37   :  { %257 = vmatpush3.bf16.msra.mxu0 %v256_v16 }
  0x38   :  { %258 = vmatprep.subr.bf16.mxu0 %v363_v2 }
  0x3b   :  { %260 = vmatpush3.bf16.msra.mxu0 %v259_v20 }
  0x3c   :  { %261 = vmatprep.subr.bf16.mxu0 %v363_v2 }
  0x3f   :  { %263 = vmatpush3.bf16.msra.mxu0 %v262_v23 }
  0x40   :  { %264 = vmatprep.subr.bf16.mxu0 %v363_v2 }
  0x43   :  { %266 = vmatpush3.bf16.msra.mxu0 %v265_v26 }
  0x44   :  { %267 = vmatprep.subr.bf16.mxu0 %v363_v2 }
  0x47   :  { %269 = vmatpush3.bf16.msra.mxu0 %v268_v29 }
  0xa7   :  { %v43_v30 = vpop.permute.xlu0 %42 }
  0xa8   :  { %v64_v34 = vpop.permute.xlu1 %63  ;;  %v49_v36 = vmul.f32 %v189_v31, %v43_v30 }
  0xa9   :  { %v70_v38 = vmul.f32 %v191_v33, %v64_v34 }
  0xac   :  { %v53_v35 = vpop.permute.xlu0 %52 }
  0xad   :  { %v59_v37 = vmul.f32 %v190_v32, %v53_v35 }
  0xaf   :  { %v60_v39 = vadd.f32 %v59_v37, %v49_v36 }
  0xb1   :  { %v71_v41 = vadd.f32 %v70_v38, %v60_v39 }
  0xb3   :  { %v77_v42 = vadd.f32 %v192_v40, %v71_v41 }
  0xb5   :  { %v78_v43 = vmax.f32 %v77_v42, 0.0 }
  0xb7   :  { %244 = vmatmul.mubr.f32.vlgmr.msra.gmra.mrb[0].mxu0 %v78_v43 }
 0x18a   :  { %v166_v45 = vpop.f32.mrb[0].mxu0 }
 0x18b   :  { %v167_v46 = vadd.f32 %v193_v44, %v166_v45  ;;  %v245_v47 = vpop.f32.mrb[1].mxu0 }
 0x18d   :  { %v170_v48 = vmax.f32 %v167_v46, 0.0 }
 0x18f   :  { %172 = vst.msk [vmem:[#allocation7] sm:$0x3] %vm171_vm1, %v170_v48 }
 0x190   :  { %340 = shalt.err (!%p337_p6)
}
 0x191   :  { %s341_s10 = scalar_lea.hbm %s428_s2, 32 }
 0x192   :  { %p342_p7 = scmp.ne.s32.totalorder %s428_s2, %s341_s10  ;;  %p345_p8 = scmp.lt.u32.totalorder %s341_s10, %s428_s2 }
 0x194   :  { %p347_p9 = pnand %p345_p8, %p342_p7 }
 0x196   :  { %350 = shalt.err (!%p347_p9)
}
 0x197   :  { %182 = dma.vmem_to_hbm [thread:$0]  %s180_s6, 32, %s428_s2, [#allocation4]  }
 0x198   :  { %355 = dma.done.wait [#allocation4], 32  }
 0x199   :  { %356 = vsyncadd [#allocation4], 4294967264 }
 0x19a   :  { %186 = vsyncpa [#allocation3], 1 }
 0x19b   :  { %187 = vsyncpa [#allocation6], 1 }
 0x19c   :  { %188 = vsyncpa [#allocation4], 1 }

</bundles_post_ra>
